<compile_context>
chip_gen: v7x
topology: tpu7x:2x2x1
jax: 0.10.0
libtpu: 0.0.40
codegen_flags: <defaults>
</compile_context>

<pallas_src>
import jax
import jax.numpy as jnp
from jax.experimental import pallas as pl
from jax.experimental.pallas import tpu as pltpu


def _round_up(x, m):
    return ((x + m - 1) // m) * m


# ----------------------------- Pallas kernel ------------------------------ #
def _autoencoder_kernel(x_ref, w1_ref, b1_ref, w2_ref, b2_ref,
                        w3_ref, b3_ref, w4_ref, b4_ref, o_ref):
    # encoder
    h = x_ref[...]
    h = jnp.sin(jnp.dot(h, w1_ref[...], preferred_element_type=jnp.float32)
                + b1_ref[...])
    h = jnp.sin(jnp.dot(h, w2_ref[...], preferred_element_type=jnp.float32)
                + b2_ref[...])
    # decoder
    h = jnp.sin(jnp.dot(h, w3_ref[...], preferred_element_type=jnp.float32)
                + b3_ref[...])
    z = jnp.dot(h, w4_ref[...], preferred_element_type=jnp.float32) + b4_ref[...]
    o_ref[...] = (1.0 / (1.0 + jnp.exp(-z))).astype(o_ref.dtype)


# ------------------------------ wrapper ----------------------------------- #
def autoencoder_forward(params, x, *, tm=128):
    """x: (B, input_size) float32.  params: list of 4 (W(in,out), b(1,out))."""
    (w1, b1), (w2, b2), (w3, b3), (w4, b4) = params
    B, d_in = x.shape
    d_hid = w1.shape[1]
    d_lat = w2.shape[1]
    assert w4.shape[1] == d_in

    # Tile the batch; pad to a sublane-friendly multiple of the tile size.
    tm = min(tm, _round_up(B, 8))
    b_pad = _round_up(B, tm)
    if b_pad != B:
        x = jnp.pad(x, ((0, b_pad - B), (0, 0)))
    grid = (b_pad // tm,)

    full = lambda i: (0, 0)  # weights / biases are whole-array blocks

    out = pl.pallas_call(
        _autoencoder_kernel,
        out_shape=jax.ShapeDtypeStruct((b_pad, d_in), jnp.float32),
        grid=grid,
        in_specs=[
            pl.BlockSpec((tm, d_in), lambda i: (i, 0)),     # x tile
            pl.BlockSpec((d_in, d_hid), full),              # W1
            pl.BlockSpec((1, d_hid), full),                 # b1
            pl.BlockSpec((d_hid, d_lat), full),             # W2
            pl.BlockSpec((1, d_lat), full),                 # b2
            pl.BlockSpec((d_lat, d_hid), full),             # W3
            pl.BlockSpec((1, d_hid), full),                 # b3
            pl.BlockSpec((d_hid, d_in), full),              # W4
            pl.BlockSpec((1, d_in), full),                  # b4
        ],
        out_specs=pl.BlockSpec((tm, d_in), lambda i: (i, 0)),
        compiler_params=pltpu.CompilerParams(
            dimension_semantics=("parallel",)),
    )(x, w1, b1, w2, b2, w3, b3, w4, b4)

    return out[:B]


# --------------------------- parameters / init ----------------------------- #
def init_params(key, input_size, hidden_size, latent_size):
    """PyTorch nn.Linear default init; weights stored as (in, out)."""
    dims = [(input_size, hidden_size),   # encoder L1
            (hidden_size, latent_size),  # encoder L2
            (latent_size, hidden_size),  # decoder L1
            (hidden_size, input_size)]   # decoder L2
    params = []
    for (din, dout) in dims:
        key, kw, kb = jax.random.split(key, 3)
        s = float(1.0 / (din ** 0.5))
        w = jax.random.uniform(kw, (din, dout), jnp.float32, -s, s)
        b = jax.random.uniform(kb, (1, dout), jnp.float32, -s, s)
        params.append((w, b))
    return params


def autoencoder_reference(params, x):
    (w1, b1), (w2, b2), (w3, b3), (w4, b4) = params
    h = jnp.sin(x @ w1 + b1)
    h = jnp.sin(h @ w2 + b2)
    h = jnp.sin(h @ w3 + b3)
    return jax.nn.sigmoid(h @ w4 + b4)


if __name__ == "__main__":
    INPUT_SIZE = 256   # e.g. a flattened 16x16 array
    HIDDEN_SIZE = 128
    LATENT_SIZE = 64
    BATCH = 8

    key = jax.random.PRNGKey(0)
    pkey, xkey = jax.random.split(key)
    params = init_params(pkey, INPUT_SIZE, HIDDEN_SIZE, LATENT_SIZE)
    x = jax.random.normal(xkey, (BATCH, INPUT_SIZE), jnp.float32)

    out = jax.jit(autoencoder_forward)(params, x)
    out = jax.block_until_ready(out)

    assert out.shape == (BATCH, INPUT_SIZE), out.shape
    assert bool(jnp.all(jnp.isfinite(out)))
    assert bool(jnp.all((out >= 0.0) & (out <= 1.0)))   # sigmoid range

    ref = autoencoder_reference(params, x)
    assert bool(jnp.allclose(out, ref, atol=2e-5, rtol=2e-5))

    print("KERNEL_OK")
</pallas_src>

<mosaic_0001>
module attributes {stable_mosaic.version = 11 : i64} {
  func.func @_autoencoder_kernel(%arg0: i32, %arg1: memref<8x256xf32, #tpu.memory_space<vmem>>, %arg2: memref<256x128xf32, #tpu.memory_space<vmem>>, %arg3: memref<1x128xf32, #tpu.memory_space<vmem>>, %arg4: memref<128x64xf32, #tpu.memory_space<vmem>>, %arg5: memref<1x64xf32, #tpu.memory_space<vmem>>, %arg6: memref<64x128xf32, #tpu.memory_space<vmem>>, %arg7: memref<1x128xf32, #tpu.memory_space<vmem>>, %arg8: memref<128x256xf32, #tpu.memory_space<vmem>>, %arg9: memref<1x256xf32, #tpu.memory_space<vmem>>, %arg10: memref<8x256xf32, #tpu.memory_space<vmem>>) attributes {dimension_semantics = [#tpu.dimension_semantics<parallel>], iteration_bounds = array<i64: 1>, scalar_prefetch = 0 : i64, scratch_operands = 0 : i64, tpu.core_type = #tpu.core_type<tc>, window_params = [{transform_indices = @transform_0, window_bounds = array<i64: 8, 256>}, {pipeline_mode = #tpu.pipeline_mode<synchronous>, transform_indices = @transform_1, window_bounds = array<i64: 256, 128>}, {pipeline_mode = #tpu.pipeline_mode<synchronous>, transform_indices = @transform_2, window_bounds = array<i64: 1, 128>}, {pipeline_mode = #tpu.pipeline_mode<synchronous>, transform_indices = @transform_3, window_bounds = array<i64: 128, 64>}, {pipeline_mode = #tpu.pipeline_mode<synchronous>, transform_indices = @transform_4, window_bounds = array<i64: 1, 64>}, {pipeline_mode = #tpu.pipeline_mode<synchronous>, transform_indices = @transform_5, window_bounds = array<i64: 64, 128>}, {pipeline_mode = #tpu.pipeline_mode<synchronous>, transform_indices = @transform_6, window_bounds = array<i64: 1, 128>}, {pipeline_mode = #tpu.pipeline_mode<synchronous>, transform_indices = @transform_7, window_bounds = array<i64: 128, 256>}, {pipeline_mode = #tpu.pipeline_mode<synchronous>, transform_indices = @transform_8, window_bounds = array<i64: 1, 256>}, {transform_indices = @transform_9, window_bounds = array<i64: 8, 256>}]} {
    %c0 = arith.constant 0 : index
    %c0_0 = arith.constant 0 : index
    %0 = vector.load %arg1[%c0, %c0_0] : memref<8x256xf32, #tpu.memory_space<vmem>>, vector<8x256xf32>
    %c0_1 = arith.constant 0 : index
    %c0_2 = arith.constant 0 : index
    %1 = vector.load %arg2[%c0_1, %c0_2] : memref<256x128xf32, #tpu.memory_space<vmem>>, vector<256x128xf32>
    %cst = arith.constant dense<0.000000e+00> : vector<8x128xf32>
    %2 = tpu.matmul %0, %1, %cst {dimension_numbers = #tpu.dot_dimension_numbers<[1], [0], [0], [1], [0, 0, 1, 1], [], []>} : vector<8x256xf32>, vector<256x128xf32>, vector<8x128xf32> -> vector<8x128xf32>
    %c0_3 = arith.constant 0 : index
    %c0_4 = arith.constant 0 : index
    %3 = vector.load %arg3[%c0_3, %c0_4] : memref<1x128xf32, #tpu.memory_space<vmem>>, vector<1x128xf32>
    %4 = vector.broadcast %3 : vector<1x128xf32> to vector<8x128xf32>
    %5 = arith.addf %2, %4 : vector<8x128xf32>
    %6 = math.sin %5 : vector<8x128xf32>
    %c0_5 = arith.constant 0 : index
    %c0_6 = arith.constant 0 : index
    %7 = vector.load %arg4[%c0_5, %c0_6] : memref<128x64xf32, #tpu.memory_space<vmem>>, vector<128x64xf32>
    %cst_7 = arith.constant dense<0.000000e+00> : vector<8x64xf32>
    %8 = tpu.matmul %6, %7, %cst_7 {dimension_numbers = #tpu.dot_dimension_numbers<[1], [0], [0], [1], [0, 0, 1, 1], [], []>} : vector<8x128xf32>, vector<128x64xf32>, vector<8x64xf32> -> vector<8x64xf32>
    %c0_8 = arith.constant 0 : index
    %c0_9 = arith.constant 0 : index
    %9 = vector.load %arg5[%c0_8, %c0_9] : memref<1x64xf32, #tpu.memory_space<vmem>>, vector<1x64xf32>
    %10 = vector.broadcast %9 : vector<1x64xf32> to vector<8x64xf32>
    %11 = arith.addf %8, %10 : vector<8x64xf32>
    %12 = math.sin %11 : vector<8x64xf32>
    %c0_10 = arith.constant 0 : index
    %c0_11 = arith.constant 0 : index
    %13 = vector.load %arg6[%c0_10, %c0_11] : memref<64x128xf32, #tpu.memory_space<vmem>>, vector<64x128xf32>
    %cst_12 = arith.constant dense<0.000000e+00> : vector<8x128xf32>
    %14 = tpu.matmul %12, %13, %cst_12 {dimension_numbers = #tpu.dot_dimension_numbers<[1], [0], [0], [1], [0, 0, 1, 1], [], []>} : vector<8x64xf32>, vector<64x128xf32>, vector<8x128xf32> -> vector<8x128xf32>
    %c0_13 = arith.constant 0 : index
    %c0_14 = arith.constant 0 : index
    %15 = vector.load %arg7[%c0_13, %c0_14] : memref<1x128xf32, #tpu.memory_space<vmem>>, vector<1x128xf32>
    %16 = vector.broadcast %15 : vector<1x128xf32> to vector<8x128xf32>
    %17 = arith.addf %14, %16 : vector<8x128xf32>
    %18 = math.sin %17 : vector<8x128xf32>
    %c0_15 = arith.constant 0 : index
    %c0_16 = arith.constant 0 : index
    %19 = vector.load %arg8[%c0_15, %c0_16] : memref<128x256xf32, #tpu.memory_space<vmem>>, vector<128x256xf32>
    %cst_17 = arith.constant dense<0.000000e+00> : vector<8x256xf32>
    %20 = tpu.matmul %18, %19, %cst_17 {dimension_numbers = #tpu.dot_dimension_numbers<[1], [0], [0], [1], [0, 0, 1, 1], [], []>} : vector<8x128xf32>, vector<128x256xf32>, vector<8x256xf32> -> vector<8x256xf32>
    %c0_18 = arith.constant 0 : index
    %c0_19 = arith.constant 0 : index
    %21 = vector.load %arg9[%c0_18, %c0_19] : memref<1x256xf32, #tpu.memory_space<vmem>>, vector<1x256xf32>
    %22 = vector.broadcast %21 : vector<1x256xf32> to vector<8x256xf32>
    %23 = arith.addf %20, %22 : vector<8x256xf32>
    %cst_20 = arith.constant 0.000000e+00 : f32
    %24 = vector.broadcast %cst_20 : f32 to vector<8x256xf32>
    %25 = arith.subf %24, %23 : vector<8x256xf32>
    %26 = math.exp %25 : vector<8x256xf32>
    %cst_21 = arith.constant 1.000000e+00 : f32
    %27 = vector.broadcast %cst_21 : f32 to vector<8x256xf32>
    %28 = arith.addf %27, %26 : vector<8x256xf32>
    %cst_22 = arith.constant 1.000000e+00 : f32
    %29 = vector.broadcast %cst_22 : f32 to vector<8x256xf32>
    %30 = arith.divf %29, %28 : vector<8x256xf32>
    %c0_23 = arith.constant 0 : index
    %c0_24 = arith.constant 0 : index
    %31 = vector.load %arg10[%c0_23, %c0_24] : memref<8x256xf32, #tpu.memory_space<vmem>>, vector<8x256xf32>
    tpu.vector_store %arg10[%c0_23, %c0_24], %30 {strides = array<i32>} : memref<8x256xf32, #tpu.memory_space<vmem>>, vector<8x256xf32>,
    return
  }
  func.func @transform_0(%arg0: i32) -> (i32, i32) {
    %c0_i32 = arith.constant 0 : i32
    %c0_i32_0 = arith.constant 0 : i32
    return %arg0, %c0_i32 : i32, i32
  }
  func.func @transform_1(%arg0: i32) -> (i32, i32) {
    %c0_i32 = arith.constant 0 : i32
    %c0_i32_0 = arith.constant 0 : i32
    %c0_i32_1 = arith.constant 0 : i32
    return %c0_i32, %c0_i32_0 : i32, i32
  }
  func.func @transform_2(%arg0: i32) -> (i32, i32) {
    %c0_i32 = arith.constant 0 : i32
    %c0_i32_0 = arith.constant 0 : i32
    %c0_i32_1 = arith.constant 0 : i32
    return %c0_i32, %c0_i32_0 : i32, i32
  }
  func.func @transform_3(%arg0: i32) -> (i32, i32) {
    %c0_i32 = arith.constant 0 : i32
    %c0_i32_0 = arith.constant 0 : i32
    %c0_i32_1 = arith.constant 0 : i32
    return %c0_i32, %c0_i32_0 : i32, i32
  }
  func.func @transform_4(%arg0: i32) -> (i32, i32) {
    %c0_i32 = arith.constant 0 : i32
    %c0_i32_0 = arith.constant 0 : i32
    %c0_i32_1 = arith.constant 0 : i32
    return %c0_i32, %c0_i32_0 : i32, i32
  }
  func.func @transform_5(%arg0: i32) -> (i32, i32) {
    %c0_i32 = arith.constant 0 : i32
    %c0_i32_0 = arith.constant 0 : i32
    %c0_i32_1 = arith.constant 0 : i32
    return %c0_i32, %c0_i32_0 : i32, i32
  }
  func.func @transform_6(%arg0: i32) -> (i32, i32) {
    %c0_i32 = arith.constant 0 : i32
    %c0_i32_0 = arith.constant 0 : i32
    %c0_i32_1 = arith.constant 0 : i32
    return %c0_i32, %c0_i32_0 : i32, i32
  }
  func.func @transform_7(%arg0: i32) -> (i32, i32) {
    %c0_i32 = arith.constant 0 : i32
    %c0_i32_0 = arith.constant 0 : i32
    %c0_i32_1 = arith.constant 0 : i32
    return %c0_i32, %c0_i32_0 : i32, i32
  }
  func.func @transform_8(%arg0: i32) -> (i32, i32) {
    %c0_i32 = arith.constant 0 : i32
    %c0_i32_0 = arith.constant 0 : i32
    %c0_i32_1 = arith.constant 0 : i32
    return %c0_i32, %c0_i32_0 : i32, i32
  }
  func.func @transform_9(%arg0: i32) -> (i32, i32) {
    %c0_i32 = arith.constant 0 : i32
    %c0_i32_0 = arith.constant 0 : i32
    return %arg0, %c0_i32 : i32, i32
  }
}

</mosaic_0001>

<bundles_post_ra>
// kernel: autoencoder_forward.1
= control target key start
LH: loop header
LB: loop body
LE: loop exit
PB: predicated region body
PF: predicated region fallthrough
CT: control target
= control target key end

     0   :  { %14 = vsyncpa [#allocation3], 0  ;;  %s1465_s0 = inlined_call_operand.vmem [shape: f32[8,256], index: 0, kind: input, shape index: {}]   ;;  %s1466_s1 = inlined_call_operand.hbm [shape: f32[256,128], index: 1, kind: input, shape index: {}]   ;;  %s1467_s2 = inlined_call_operand.vmem [shape: f32[1,128], index: 2, kind: input, shape index: {}]   ;;  %s1468_s3 = inlined_call_operand.vmem [shape: f32[128,64], index: 3, kind: input, shape index: {}]   ;;  %s1469_s4 = inlined_call_operand.vmem [shape: f32[1,64], index: 4, kind: input, shape index: {}]   ;;  %s1470_s5 = inlined_call_operand.vmem [shape: f32[64,128], index: 5, kind: input, shape index: {}]   ;;  %s1471_s6 = inlined_call_operand.vmem [shape: f32[1,128], index: 6, kind: input, shape index: {}]   ;;  %s1472_s7 = inlined_call_operand.hbm [shape: f32[128,256], index: 7, kind: input, shape index: {}]   ;;  %s1473_s8 = inlined_call_operand.vmem [shape: f32[1,256], index: 8, kind: input, shape index: {}]   ;;  %s1474_s9 = inlined_call_operand.hbm [shape: f32[8,256], index: 9, kind: output, shape index: {}]  }
   0x1   :  { %15 = vsyncpa [#allocation6], 0 }
   0x2   :  { %16 = vsyncpa [#allocation4], 0  ;;  %s1162_s30 = smov [#allocation2]   ;;  %s1090_s13 = scalar_lea.hbm %s1466_s1, 4096 }
   0x3   :  { %s24_s10 = sshll.u32 %s1162_s30, 4  ;;  %p1091_p0 = scmp.ne.s32.totalorder %s1466_s1, %s1090_s13  ;;  %s25_s10 = int_to_ptr.vmem [resolvable:$true] %s24_s10 }
   0x4   :  { %p1094_p1 = scmp.lt.u32.totalorder %s1090_s13, %s1466_s1 }
   0x6   :  { %p1096_p2 = pnand %p1094_p1, %p1091_p0 }
   0x8   :  { %1099 = shalt.err (!%p1096_p2)
}
   0x9   :  { %s1100_s18 = scalar_lea.vmem %s25_s10, 4096  ;;  %p1105_p4 = scmp.lt.s32.totalorder %s25_s10, %s25_s10 }
   0xa   :  { %p1101_p3 = scmp.ne.s32.totalorder %s25_s10, %s1100_s18  ;;  %p1106_p5 = scmp.lt.s32.totalorder %s1100_s18, %s1100_s18 }
   0xc   :  { %p1107_p6 = por %p1106_p5, %p1105_p4 }
   0xe   :  { %p1108_p7 = pnand %p1107_p6, %p1101_p3 }
  0x10   :  { %1111 = shalt.err (!%p1108_p7)
}
  0x11   :  { %s1163_s19 = smov 128   ;;  %s1164_s20 = smov 8  }
  0x12   :  { %30 = dma.hbm_to_vmem [thread:$0]  %s1466_s1, 4096, %s25_s10, [#allocation3], %s1163_s19, %s1163_s19, %s1164_s20  }
  0x13   :  { %s1165_s23 = smov [#allocation5]   ;;  %s1112_s27 = scalar_lea.hbm %s1472_s7, 4096 }
  0x14   :  { %s46_s24 = sshll.u32 %s1165_s23, 4  ;;  %p1113_p8 = scmp.ne.s32.totalorder %s1472_s7, %s1112_s27  ;;  %s47_s24 = int_to_ptr.vmem [resolvable:$true] %s46_s24 }
  0x15   :  { %p1116_p9 = scmp.lt.u32.totalorder %s1112_s27, %s1472_s7 }
  0x17   :  { %p1118_p10 = pnand %p1116_p9, %p1113_p8 }
  0x19   :  { %1121 = shalt.err (!%p1118_p10)
}
  0x1a   :  { %s1122_s12 = scalar_lea.vmem %s47_s24, 4096  ;;  %p1127_p12 = scmp.lt.s32.totalorder %s47_s24, %s47_s24 }
  0x1b   :  { %p1123_p11 = scmp.ne.s32.totalorder %s47_s24, %s1122_s12  ;;  %p1128_p13 = scmp.lt.s32.totalorder %s1122_s12, %s1122_s12 }
  0x1d   :  { %p1129_p0 = por %p1128_p13, %p1127_p12 }
  0x1f   :  { %p1130_p1 = pnand %p1129_p0, %p1123_p11 }
  0x21   :  { %1133 = shalt.err (!%p1130_p1)
}
  0x22   :  { %s1166_s1 = smov 256   ;;  %s1167_s10 = smov 16  }
  0x23   :  { %52 = dma.hbm_to_vmem [thread:$0]  %s1472_s7, 4096, %s47_s24, [#allocation6], %s1166_s1, %s1166_s1, %s1167_s10  }
  0x24   :  { %1156 = dma.done.wait [#allocation3], 4096  }
  0x25   :  { %1157 = vsyncadd [#allocation3], 4294963200 }
  0x26   :  { %1158 = dma.done.wait [#allocation6], 4096  }
  0x27   :  { %1159 = vsyncadd [#allocation6], 4294963200  ;;  %v79_v0 = vld [vmem:[#allocation2 + $0x80] sm:$0xff]  ;;  %v80_v1 = vld [vmem:[#allocation2 + $0x88] sm:$0xff]  ;;  %v1168_v53 = vmov 0.0|0.0   ;;  %vm1169_vm0 = vmmov 0  }
  0x28   :  { %v63_v2 = vld [vmem:[#allocation2] sm:$0xff]  ;;  %v942_v3 = vpack.c.bf16 %v80_v1, %v79_v0  ;;  %v64_v4 = vld [vmem:[#allocation2 + $0x8] sm:$0xff]  ;;  %v81_v5 = vld [vmem:[#allocation2 + $0x90] sm:$0xff]  ;;  %974 = vmatprep.subr.bf16.mxu1 %v1168_v53  ;;  %v1170_v56 = vmov 0.0  }
  0x29   :  { %v82_v6 = vld [vmem:[#allocation2 + $0x98] sm:$0xff]  ;;  %v944_v7 = vpack.c.bf16 %v64_v4, %v63_v2  ;;  %v65_v9 = vld [vmem:[#allocation2 + $0x10] sm:$0xff]  ;;  %v83_v11 = vld [vmem:[#allocation2 + $0xa0] sm:$0xff]  ;;  %920 = vmatprep.mubr.msk.f32.mxu1 %vm1169_vm0, %v1170_v56 }
  0x2a   :  { %v946_v8 = vpack.c.bf16 %v82_v6, %v81_v5  ;;  %v66_v10 = vld [vmem:[#allocation2 + $0x18] sm:$0xff]  ;;  %943 = vmatprep.subr.bf16.mxu0 %v942_v3  ;;  %v84_v12 = vld [vmem:[#allocation2 + $0xa8] sm:$0xff]  ;;  %v67_v15 = vld [vmem:[#allocation2 + $0x20] sm:$0xff] }
  0x2b   :  { %945 = vmatpush3.bf16.msra.mxu0 %v944_v7  ;;  %v948_v13 = vpack.c.bf16 %v66_v10, %v65_v9  ;;  %v950_v14 = vpack.c.bf16 %v84_v12, %v83_v11  ;;  %v68_v16 = vld [vmem:[#allocation2 + $0x28] sm:$0xff]  ;;  %v85_v17 = vld [vmem:[#allocation2 + $0xb0] sm:$0xff]  ;;  %v86_v18 = vld [vmem:[#allocation2 + $0xb8] sm:$0xff] }
  0x2c   :  { %947 = vmatprep.subr.bf16.mxu0 %v946_v8  ;;  %v952_v19 = vpack.c.bf16 %v68_v16, %v67_v15  ;;  %v954_v20 = vpack.c.bf16 %v86_v18, %v85_v17  ;;  %v69_v21 = vld [vmem:[#allocation2 + $0x30] sm:$0xff]  ;;  %v70_v22 = vld [vmem:[#allocation2 + $0x38] sm:$0xff]  ;;  %v87_v23 = vld [vmem:[#allocation2 + $0xc0] sm:$0xff] }
  0x2d   :  { %v88_v24 = vld [vmem:[#allocation2 + $0xc8] sm:$0xff]  ;;  %v956_v26 = vpack.c.bf16 %v70_v22, %v69_v21  ;;  %v71_v28 = vld [vmem:[#allocation2 + $0x40] sm:$0xff]  ;;  %v89_v30 = vld [vmem:[#allocation2 + $0xd0] sm:$0xff] }
  0x2e   :  { %v62_v25 = vld [vmem:[%s1465_s0 + $0x8] sm:$0xff]  ;;  %v958_v27 = vpack.c.bf16 %v88_v24, %v87_v23  ;;  %v90_v31 = vld [vmem:[#allocation2 + $0xd8] sm:$0xff]  ;;  %v73_v34 = vld [vmem:[#allocation2 + $0x50] sm:$0xff] }
  0x2f   :  { %949 = vmatpush3.bf16.msra.mxu0 %v948_v13  ;;  %166 = vmatprep.mubr.f32.mxu0 %v62_v25  ;;  %v72_v29 = vld [vmem:[#allocation2 + $0x48] sm:$0xff]  ;;  %v962_v33 = vpack.c.bf16 %v90_v31, %v89_v30  ;;  %v74_v35 = vld [vmem:[#allocation2 + $0x58] sm:$0xff]  ;;  %v91_v36 = vld [vmem:[#allocation2 + $0xe0] sm:$0xff]  ;;  %v1172_v30 = vmov 920167782  }
  0x30   :  { %951 = vmatprep.subr.bf16.mxu0 %v950_v14  ;;  %v960_v32 = vpack.c.bf16 %v72_v29, %v71_v28  ;;  %v92_v37 = vld [vmem:[#allocation2 + $0xe8] sm:$0xff]  ;;  %v964_v38 = vpack.c.bf16 %v74_v35, %v73_v34  ;;  %v75_v40 = vld [vmem:[#allocation2 + $0x60] sm:$0xff]  ;;  %v93_v42 = vld [vmem:[#allocation2 + $0xf0] sm:$0xff]  ;;  %v1171_v28 = vmov 2102212464  }
  0x31   :  { %v966_v39 = vpack.c.bf16 %v92_v37, %v91_v36  ;;  %v76_v41 = vld [vmem:[#allocation2 + $0x68] sm:$0xff]  ;;  %v94_v43 = vld [vmem:[#allocation2 + $0xf8] sm:$0xff]  ;;  %v77_v46 = vld [vmem:[#allocation2 + $0x70] sm:$0xff]  ;;  %v1173_v34 = vmov 1326507024  }
  0x32   :  { %v968_v44 = vpack.c.bf16 %v76_v41, %v75_v40  ;;  %v970_v45 = vpack.c.bf16 %v94_v43, %v93_v42  ;;  %v78_v47 = vld [vmem:[#allocation2 + $0x78] sm:$0xff]  ;;  %v61_v49 = vld [vmem:[%s1465_s0] sm:$0xff]  ;;  %v277_v51 = vld [vmem:[%s1468_s3 + $0x8] sm:$0xff]  ;;  %v1174_v36 = vmov 683565275  }
  0x33   :  { %953 = vmatpush3.bf16.msra.mxu0 %v952_v19  ;;  %v972_v48 = vpack.c.bf16 %v78_v47, %v77_v46  ;;  %v276_v50 = vld [vmem:[%s1468_s3] sm:$0xff]  ;;  %v278_v52 = vld [vmem:[%s1468_s3 + $0x10] sm:$0xff]  ;;  %v279_v55 = vld [vmem:[%s1468_s3 + $0x18] sm:$0xff]  ;;  %v1176_v41 = vmov 2131351028  }
  0x34   :  { %955 = vmatprep.subr.bf16.mxu0 %v954_v20  ;;  %v975_v54 = vpack.c.bf16 %v277_v51, %v276_v50  ;;  %v978_v57 = vpack.c.bf16 %v279_v55, %v278_v52  ;;  %v280_v58 = vld [vmem:[%s1468_s3 + $0x20] sm:$0xff]  ;;  %v281_v59 = vld [vmem:[%s1468_s3 + $0x28] sm:$0xff]  ;;  %v282_v61 = vld [vmem:[%s1468_s3 + $0x30] sm:$0xff] }
  0x35   :  { %v981_v60 = vpack.c.bf16 %v281_v59, %v280_v58  ;;  %v283_v62 = vld [vmem:[%s1468_s3 + $0x38] sm:$0xff]  ;;  %v284_v0 = vld [vmem:[%s1468_s3 + $0x40] sm:$0xff]  ;;  %v285_v1 = vld [vmem:[%s1468_s3 + $0x48] sm:$0xff] }
  0x36   :  { %976 = vmatpush3.bf16.msra.mxu1 %v975_v54  ;;  %v984_v63 = vpack.c.bf16 %v283_v62, %v282_v61  ;;  %v987_v2 = vpack.c.bf16 %v285_v1, %v284_v0  ;;  %v286_v3 = vld [vmem:[%s1468_s3 + $0x50] sm:$0xff]  ;;  %v287_v4 = vld [vmem:[%s1468_s3 + $0x58] sm:$0xff]  ;;  %v288_v6 = vld [vmem:[%s1468_s3 + $0x60] sm:$0xff] }
  0x37   :  { %957 = vmatpush3.bf16.msra.mxu0 %v956_v26  ;;  %977 = vmatprep.subr.bf16.mxu1 %v1168_v53  ;;  %v990_v5 = vpack.c.bf16 %v287_v4, %v286_v3  ;;  %v289_v7 = vld [vmem:[%s1468_s3 + $0x68] sm:$0xff]  ;;  %v290_v9 = vld [vmem:[%s1468_s3 + $0x70] sm:$0xff]  ;;  %v291_v10 = vld [vmem:[%s1468_s3 + $0x78] sm:$0xff] }
  0x38   :  { %959 = vmatprep.subr.bf16.mxu0 %v958_v27  ;;  %v993_v8 = vpack.c.bf16 %v289_v7, %v288_v6  ;;  %v996_v11 = vpack.c.bf16 %v291_v10, %v290_v9  ;;  %v811_v13 = vld [vmem:[%s1467_s2] ss:$0 sm:$0xff] }
  0x3a   :  { %979 = vmatpush3.bf16.msra.mxu1 %v978_v57 }
  0x3b   :  { %961 = vmatpush3.bf16.msra.mxu0 %v960_v32  ;;  %980 = vmatprep.subr.bf16.mxu1 %v1168_v53 }
  0x3c   :  { %963 = vmatprep.subr.bf16.mxu0 %v962_v33 }
  0x3e   :  { %982 = vmatpush3.bf16.msra.mxu1 %v981_v60 }
  0x3f   :  { %965 = vmatpush3.bf16.msra.mxu0 %v964_v38  ;;  %983 = vmatprep.subr.bf16.mxu1 %v1168_v53  ;;  %v1175_v38 = vmov 2475754826  }
  0x40   :  { %967 = vmatprep.subr.bf16.mxu0 %v966_v39 }
  0x42   :  { %985 = vmatpush3.bf16.msra.mxu1 %v984_v63 }
  0x43   :  { %969 = vmatpush3.bf16.msra.mxu0 %v968_v44  ;;  %986 = vmatprep.subr.bf16.mxu1 %v1168_v53 }
  0x44   :  { %971 = vmatprep.subr.bf16.mxu0 %v970_v45 }
  0x46   :  { %988 = vmatpush3.bf16.msra.mxu1 %v987_v2 }
  0x47   :  { %973 = vmatpush3.bf16.msra.mxu0 %v972_v48  ;;  %989 = vmatprep.subr.bf16.mxu1 %v1168_v53 }
  0x48   :  { %998 = vmatprep.subr.bf16.mxu0 %v1168_v53 }
  0x4a   :  { %167 = vmatmul.mubr.f32.vlgmr.msra.gmra.mrb[0].mxu0 %v61_v49  ;;  %991 = vmatpush3.bf16.msra.mxu1 %v990_v5 }
  0x4b   :  { %939 = vmatprep.mubr.msk.f32.mxu0 %vm1169_vm0, %v1170_v56  ;;  %992 = vmatprep.subr.bf16.mxu1 %v1168_v53 }
  0x4e   :  { %994 = vmatpush3.bf16.msra.mxu1 %v993_v8 }
  0x4f   :  { %995 = vmatprep.subr.bf16.mxu1 %v1168_v53 }
  0x52   :  { %997 = vmatpush3.bf16.msra.mxu1 %v996_v11 }
 0x11d   :  { %v859_v12 = vpop.f32.mrb[0].mxu0 }
 0x11e   :  { %v860_v14 = vpop.f32.mrb[1].mxu0 }
 0x11f   :  { %v861_v15 = vadd.f32 %v860_v14, %v859_v12 }
 0x121   :  { %v1320_v16 = vadd.f32 %v861_v15, %v811_v13 }
 0x123   :  { %v175_v17 = vand.u32 2139095040, %v1320_v16  ;;  %v172_v18 = vand.u32 2147483647, %v1320_v16  ;;  %vm174_vm8 = vcmp.lt.s32.totalorder %v1320_v16, 0  ;;  %vm264_vm13 = vweird.f32 %v1320_v16 }
 0x125   :  { %v176_v19 = vshrl.u32 %v175_v17, 23  ;;  %v179_v21 = vand.u32 8388607, %v172_v18  ;;  %vm173_vm9 = vcmp.le.f32.partialorder %v172_v18, 0.7853982 }
 0x127   :  { %v812_v20 = vadd.s32 4294967169, %v176_v19  ;;  %v180_v24 = vor.u32 8388608, %v179_v21 }
 0x129   :  { %v182_v22 = vadd.s32 1, %v812_v20  ;;  %v220_v32 = vshll.u32 %v180_v24, 8 }
 0x12b   :  { %vm183_vm1 = vcmp.gt.s32.totalorder %v182_v22, 0 }
 0x12c   :  { %v184_v23 = vsel %vm183_vm1, %v182_v22, 0 }
 0x12d   :  { %v186_v25 = vand.u32 31, %v184_v23  ;;  %v185_v26 = vshrl.u32 %v184_v23, 5 }
 0x12f   :  { %v187_v27 = vsub.s32 32, %v186_v25  ;;  %v198_v29 = vshll.u32 %v1171_v28, %v186_v25  ;;  %v201_v31 = vshll.u32 %v1172_v30, %v186_v25  ;;  %v189_v37 = vshll.u32 %v1174_v36, %v186_v25 }
 0x130   :  { %v192_v40 = vshll.u32 %v1175_v38, %v186_v25  ;;  %v195_v43 = vshll.u32 %v1176_v41, %v186_v25  ;;  %vm207_vm2 = vcmp.lt.s32.totalorder %v185_v26, 4  ;;  %vm204_vm3 = vcmp.lt.s32.totalorder %v185_v26, 1 }
 0x131   :  { %v199_v33 = vshrl.u32 %v1172_v30, %v187_v27  ;;  %v202_v35 = vshrl.u32 %v1173_v34, %v187_v27  ;;  %v190_v39 = vshrl.u32 %v1175_v38, %v187_v27  ;;  %v193_v42 = vshrl.u32 %v1176_v41, %v187_v27 }
 0x132   :  { %v196_v44 = vshrl.u32 %v1171_v28, %v187_v27  ;;  %v188_v48 = vshrl.u32 %v1174_v36, %v187_v27  ;;  %vm205_vm4 = vcmp.lt.s32.totalorder %v185_v26, 2  ;;  %vm206_vm5 = vcmp.lt.s32.totalorder %v185_v26, 3 }
 0x133   :  { %v200_v45 = vor.u32 %v199_v33, %v198_v29  ;;  %v203_v46 = vor.u32 %v202_v35, %v201_v31  ;;  %v191_v47 = vor.u32 %v190_v39, %v189_v37  ;;  %v194_v49 = vor.u32 %v193_v42, %v192_v40 }
 0x134   :  { %v197_v50 = vor.u32 %v196_v44, %v195_v43 }
 0x135   :  { %v213_v51 = vsel %vm207_vm2, %v200_v45, 920167782  ;;  %v217_v52 = vsel %vm207_vm2, %v203_v46, 1326507024  ;;  %v212_v55 = vsel %vm204_vm3, %v191_v47, %v194_v49  ;;  %v208_v59 = vsel %vm204_vm3, %v188_v48, %v191_v47 }
 0x136   :  { %v209_v54 = vsel %vm207_vm2, %v197_v50, 2102212464  ;;  %v214_v57 = vsel %vm206_vm5, %v197_v50, %v213_v51  ;;  %v216_v58 = vsel %vm204_vm3, %v194_v49, %v197_v50  ;;  %v218_v62 = vsel %vm206_vm5, %v200_v45, %v217_v52 }
 0x137   :  { %v210_v60 = vsel %vm206_vm5, %v194_v49, %v209_v54  ;;  %v215_v61 = vsel %vm205_vm4, %v212_v55, %v214_v57  ;;  %v219_v63 = vsel %vm205_vm4, %v216_v58, %v218_v62  ;;  %v473_v54 = vld [vmem:[%s1470_s5] sm:$0xff]  ;;  %v474_v55 = vld [vmem:[%s1470_s5 + $0x8] sm:$0xff]  ;;  %v475_v58 = vld [vmem:[%s1470_s5 + $0x10] sm:$0xff] }
 0x138   :  { %v1337_v0 = vmul.u32.u64.low %v220_v32, %v215_v61  ;;  %v1338_v1 = vmul.u32.u64.high %v220_v32, %v215_v61, %v1337_v0  ;;  %v1340_v2 = vmul.u32.u64.low %v220_v32, %v219_v63  ;;  %v1341_v3 = vmul.u32.u64.high %v220_v32, %v219_v63, %v1340_v2  ;;  %v479_v62 = vld [vmem:[%s1470_s5 + $0x30] sm:$0xff]  ;;  %v480_v63 = vld [vmem:[%s1470_s5 + $0x38] sm:$0xff] }
 0x139   :  { %v211_v4 = vsel %vm205_vm4, %v208_v59, %v210_v60  ;;  %v999_v57 = vpack.c.bf16 %v474_v55, %v473_v54  ;;  %v478_v60 = vld [vmem:[%s1470_s5 + $0x28] sm:$0xff] }
 0x13a   :  { %v230_v5 = vadd.s32 1, %v1338_v1  ;;  %v227_v6 = vmul.u32 %v220_v32, %v211_v4  ;;  %vm229_vm6 = vc.u32 %v1341_v3, %v1337_v0  ;;  %v228_v20 = vadd.s32 %v1337_v0, %v1341_v3 }
 0x13b   :  { %1000 = vmatpush3.bf16.msra.mxu0 %v999_v57  ;;  %v1008_v0 = vpack.c.bf16 %v480_v63, %v479_v62 }
 0x13c   :  { %v231_v7 = vsel %vm229_vm6, %v230_v5, %v1338_v1  ;;  %1001 = vmatprep.subr.bf16.mxu0 %v1168_v53  ;;  %v816_v1 = vld [vmem:[%s1469_s4] ss:$0 sm:$0xff] }
 0x13d   :  { %v232_v8 = vadd.s32 %v231_v7, %v227_v6 }
 0x13f   :  { %v233_v9 = vadd.s32 536870912, %v232_v8 }
 0x141   :  { %v234_v10 = vshrl.u32 %v233_v9, 30 }
 0x143   :  { %v235_v11 = vshll.u32 %v234_v10, 30  ;;  %v258_v35 = vsub.s32 4, %v234_v10 }
 0x145   :  { %v236_v12 = vsub.s32 %v232_v8, %v235_v11  ;;  %v259_v40 = vsel %vm174_vm8, %v258_v35, %v234_v10 }
 0x146   :  { %v261_v43 = vsel %vm173_vm9, 0, %v259_v40 }
 0x147   :  { %v238_v13 = vsub.s32 0, %v236_v12  ;;  %v265_v44 = vadd.s32 3, %v261_v43 }
 0x149   :  { %v813_v14 = vmin.u32 %v238_v13, %v236_v12  ;;  %v266_v45 = vand.u32 3, %v265_v44 }
 0x14b   :  { %v240_v15 = vclz %v813_v14  ;;  %vm271_vm10 = vcmp.eq.s32.totalorder %v266_v45, 2  ;;  %vm268_vm11 = vcmp.eq.s32.totalorder %v266_v45, 0  ;;  %vm267_vm12 = vcmp.lt.s32.totalorder %v266_v45, 2 }
 0x14d   :  { %v814_v17 = vadd.s32 4294967294, %v240_v15 }
 0x14f   :  { %vm815_vm7 = vcmp.lt.s32.totalorder %v814_v17, 0 }
 0x150   :  { %v243_v19 = vsel %vm815_vm7, 0, %v814_v17 }
 0x151   :  { %v244_v21 = vsub.s32 32, %v243_v19  ;;  %v248_v22 = vsub.s32 4294967266, %v243_v19  ;;  %v245_v23 = vshll.u32 %v236_v12, %v243_v19 }
 0x153   :  { %v246_v24 = vshrl.u32 %v228_v20, %v244_v21  ;;  %v249_v25 = vadd.s32 127, %v248_v22 }
 0x155   :  { %v247_v26 = vor.u32 %v246_v24, %v245_v23  ;;  %v250_v27 = vshll.u32 %v249_v25, 23 }
 0x157   :  { %v251_v29 = vor.u32 4788187, %v250_v27  ;;  %v254_v32 = vcvt.s32.f32 %v247_v26 }
 0x159   :  { %v252_v31 = vand.u32 2147483647, %v251_v29 }
 0x15b   :  { %v255_v33 = vmul.f32 %v254_v32, %v252_v31 }
 0x15d   :  { %v256_v37 = vxor.u32 2147483648, %v255_v33 }
 0x15f   :  { %v257_v39 = vsel %vm174_vm8, %v256_v37, %v255_v33 }
 0x160   :  { %v260_v42 = vsel %vm173_vm9, %v1320_v16, %v257_v39  ;;  %v476_v16 = vld [vmem:[%s1470_s5 + $0x18] sm:$0xff] }
 0x161   :  { %1070 = vcosq.f32 %v260_v42  ;;  %v1002_v59 = vpack.c.bf16 %v476_v16, %v475_v58 }
 0x162   :  { %1072 = vsinq.f32 %v260_v42 }
 0x163   :  { %1003 = vmatpush3.bf16.msra.mxu0 %v1002_v59 }
 0x164   :  { %1004 = vmatprep.subr.bf16.mxu0 %v1168_v53 }
 0x16b   :  { %v1071_v46 = vpop.eup %1070 }
 0x16c   :  { %v1073_v47 = vpop.eup %1072  ;;  %v272_v48 = vxor.u32 2147483648, %v1071_v46 }
 0x16d   :  { %v269_v49 = vxor.u32 2147483648, %v1073_v47 }
 0x16e   :  { %v273_v50 = vsel %vm271_vm10, %v272_v48, %v1073_v47  ;;  %vm488_vm10 = vcmask 523264  }
 0x16f   :  { %v270_v51 = vsel %vm268_vm11, %v1071_v46, %v269_v49 }
 0x170   :  { %v274_v18 = vsel %vm267_vm12, %v270_v51, %v273_v50 }
 0x171   :  { %v275_v52 = vsel %vm264_vm13, nan, %v274_v18 }
 0x172   :  { %921 = vmatmul.mubr.f32.vlgmr.msra.gmra.mrb[0].mxu1 %v275_v52 }
 0x173   :  { %774 = vmatprep.mubr.f32.mxu1 %v1170_v56  ;;  %v477_v56 = vld [vmem:[%s1470_s5 + $0x20] sm:$0xff] }
 0x174   :  { %v1005_v61 = vpack.c.bf16 %v478_v60, %v477_v56 }
 0x176   :  { %1006 = vmatpush3.bf16.msra.mxu0 %v1005_v61 }
 0x177   :  { %1007 = vmatprep.subr.bf16.mxu0 %v1168_v53 }
 0x17a   :  { %1009 = vmatpush3.bf16.msra.mxu0 %v1008_v0 }
 0x245   :  { %v365_v2 = vpop.f32.mrb[0].mxu1 }
 0x246   :  { %v1383_v3 = vadd.f32 %v816_v1, %v365_v2  ;;  %v922_v4 = vpop.f32.mrb[1].mxu1 }
 0x248   :  { %v372_v5 = vand.u32 2139095040, %v1383_v3  ;;  %v369_v9 = vand.u32 2147483647, %v1383_v3  ;;  %vm371_vm5 = vcmp.lt.s32.totalorder %v1383_v3, 0  ;;  %vm461_vm11 = vweird.f32 %v1383_v3 }
 0x24a   :  { %v373_v6 = vshrl.u32 %v372_v5, 23  ;;  %v376_v53 = vand.u32 8388607, %v369_v9  ;;  %vm370_vm6 = vcmp.le.f32.partialorder %v369_v9, 0.7853982 }
 0x24c   :  { %v817_v7 = vadd.s32 4294967169, %v373_v6  ;;  %v377_v26 = vor.u32 8388608, %v376_v53 }
 0x24e   :  { %v379_v8 = vadd.s32 1, %v817_v7  ;;  %v417_v46 = vshll.u32 %v377_v26, 8 }
 0x250   :  { %vm380_vm14 = vcmp.gt.s32.totalorder %v379_v8, 0 }
 0x251   :  { %v381_v10 = vsel %vm380_vm14, %v379_v8, 0 }
 0x252   :  { %v383_v11 = vand.u32 31, %v381_v10  ;;  %v382_v13 = vshrl.u32 %v381_v10, 5 }
 0x254   :  { %v384_v12 = vsub.s32 32, %v383_v11  ;;  %v386_v14 = vshll.u32 %v1174_v36, %v383_v11  ;;  %v389_v15 = vshll.u32 %v1175_v38, %v383_v11  ;;  %v392_v20 = vshll.u32 %v1176_v41, %v383_v11 }
 0x255   :  { %v395_v22 = vshll.u32 %v1171_v28, %v383_v11  ;;  %v398_v24 = vshll.u32 %v1172_v30, %v383_v11  ;;  %vm401_vm15 = vcmp.lt.s32.totalorder %v382_v13, 1  ;;  %vm404_vm0 = vcmp.lt.s32.totalorder %v382_v13, 4 }
 0x256   :  { %v387_v17 = vshrl.u32 %v1175_v38, %v384_v12  ;;  %v390_v19 = vshrl.u32 %v1176_v41, %v384_v12  ;;  %v393_v21 = vshrl.u32 %v1171_v28, %v384_v12  ;;  %v396_v23 = vshrl.u32 %v1172_v30, %v384_v12 }
 0x257   :  { %v399_v25 = vshrl.u32 %v1173_v34, %v384_v12  ;;  %v385_v40 = vshrl.u32 %v1174_v36, %v384_v12  ;;  %vm403_vm1 = vcmp.lt.s32.totalorder %v382_v13, 3  ;;  %vm402_vm2 = vcmp.lt.s32.totalorder %v382_v13, 2 }
 0x258   :  { %v388_v27 = vor.u32 %v387_v17, %v386_v14  ;;  %v391_v29 = vor.u32 %v390_v19, %v389_v15  ;;  %v394_v31 = vor.u32 %v393_v21, %v392_v20  ;;  %v397_v32 = vor.u32 %v396_v23, %v395_v22 }
 0x259   :  { %v400_v33 = vor.u32 %v399_v25, %v398_v24 }
 0x25a   :  { %v406_v35 = vsel %vm404_vm0, %v394_v31, 2102212464  ;;  %v409_v37 = vsel %vm401_vm15, %v388_v27, %v391_v29  ;;  %v413_v39 = vsel %vm401_vm15, %v391_v29, %v394_v31  ;;  %v410_v42 = vsel %vm404_vm0, %v397_v32, 920167782 }
 0x25b   :  { %v414_v43 = vsel %vm404_vm0, %v400_v33, 1326507024  ;;  %v411_v44 = vsel %vm403_vm1, %v394_v31, %v410_v42  ;;  %v405_v47 = vsel %vm401_vm15, %v385_v40, %v388_v27  ;;  %v407_v48 = vsel %vm403_vm1, %v391_v29, %v406_v35  ;;  %v669_v40 = vld [vmem:[#allocation5 + $0x18] sm:$0xff] }
 0x25c   :  { %v415_v45 = vsel %vm403_vm1, %v397_v32, %v414_v43  ;;  %v412_v49 = vsel %vm402_vm2, %v409_v37, %v411_v44  ;;  %v408_v55 = vsel %vm402_vm2, %v405_v47, %v407_v48  ;;  %v666_v43 = vld [vmem:[#allocation5] sm:$0xff]  ;;  %v668_v44 = vld [vmem:[#allocation5 + $0x10] sm:$0xff]  ;;  %v673_v47 = vld [vmem:[#allocation5 + $0x38] sm:$0xff] }
 0x25d   :  { %v416_v50 = vsel %vm402_vm2, %v413_v39, %v415_v45  ;;  %v1403_v52 = vmul.u32.u64.low %v417_v46, %v412_v49  ;;  %v1404_v54 = vmul.u32.u64.high %v417_v46, %v412_v49, %v1403_v52  ;;  %v424_v58 = vmul.u32 %v417_v46, %v408_v55  ;;  %v667_v39 = vld [vmem:[#allocation5 + $0x8] sm:$0xff]  ;;  %v670_v49 = vld [vmem:[#allocation5 + $0x20] sm:$0xff]  ;;  %v676_v55 = vld [vmem:[#allocation5 + $0x50] sm:$0xff] }
 0x25e   :  { %v1400_v51 = vmul.u32.u64.low %v417_v46, %v416_v50  ;;  %v1401_v18 = vmul.u32.u64.high %v417_v46, %v416_v50, %v1400_v51  ;;  %v1010_v42 = vpack.c.bf16 %v669_v40, %v667_v39  ;;  %v1012_v45 = vpack.c.bf16 %v668_v44, %v666_v43  ;;  %v671_v46 = vld [vmem:[#allocation5 + $0x28] sm:$0xff]  ;;  %v672_v50 = vld [vmem:[#allocation5 + $0x30] sm:$0xff] }
 0x25f   :  { %v427_v57 = vadd.s32 1, %v1404_v54  ;;  %v1014_v48 = vpack.c.bf16 %v673_v47, %v671_v46  ;;  %v1016_v51 = vpack.c.bf16 %v672_v50, %v670_v49 }
 0x260   :  { %vm426_vm3 = vc.u32 %v1401_v18, %v1403_v52  ;;  %v425_v5 = vadd.s32 %v1403_v52, %v1401_v18  ;;  %1011 = vmatprep.subr.bf16.mxu1 %v1010_v42  ;;  %v677_v18 = vld [vmem:[#allocation5 + $0x58] sm:$0xff] }
 0x261   :  { %v428_v16 = vsel %vm426_vm3, %v427_v57, %v1404_v54  ;;  %1013 = vmatpush1.bf16.msra.mxu1 %v1012_v45  ;;  %v674_v54 = vld [vmem:[#allocation5 + $0x40] sm:$0xff] }
 0x262   :  { %v429_v59 = vadd.s32 %v428_v16, %v424_v58  ;;  %1015 = vmatprep.subr.bf16.mxu1 %v1014_v48  ;;  %v1020_v57 = vpack.c.bf16 %v676_v55, %v674_v54  ;;  %v679_v58 = vld [vmem:[#allocation5 + $0x68] sm:$0xff]  ;;  %v681_v16 = vld [vmem:[#allocation5 + $0x78] sm:$0xff] }
 0x264   :  { %v430_v56 = vadd.s32 536870912, %v429_v59 }
 0x265   :  { %1017 = vmatpush1.bf16.msra.mxu1 %v1016_v51 }
 0x266   :  { %v431_v60 = vshrl.u32 %v430_v56, 30  ;;  %v678_v56 = vld [vmem:[#allocation5 + $0x60] sm:$0xff] }
 0x268   :  { %v432_v61 = vshll.u32 %v431_v60, 30  ;;  %v455_v19 = vsub.s32 4, %v431_v60 }
 0x26a   :  { %v433_v62 = vsub.s32 %v429_v59, %v432_v61  ;;  %v456_v22 = vsel %vm371_vm5, %v455_v19, %v431_v60  ;;  %v1022_v59 = vpack.c.bf16 %v681_v16, %v679_v58  ;;  %v680_v60 = vld [vmem:[#allocation5 + $0x70] sm:$0xff]  ;;  %v697_v19 = vld [vmem:[#allocation5 + $0xf8] sm:$0xff] }
 0x26b   :  { %v458_v24 = vsel %vm370_vm6, 0, %v456_v22  ;;  %v1024_v61 = vpack.c.bf16 %v680_v60, %v678_v56  ;;  %v694_v22 = vld [vmem:[#allocation5 + $0xe0] sm:$0xff] }
 0x26c   :  { %v435_v63 = vsub.s32 0, %v433_v62  ;;  %v462_v25 = vadd.s32 3, %v458_v24 }
 0x26e   :  { %v818_v0 = vmin.u32 %v435_v63, %v433_v62  ;;  %v463_v26 = vand.u32 3, %v462_v25  ;;  %v685_v63 = vld [vmem:[#allocation5 + $0x98] sm:$0xff]  ;;  %v821_v25 = vld [vmem:[%s1471_s6] ss:$0 sm:$0xff] }
 0x270   :  { %v437_v1 = vclz %v818_v0  ;;  %vm468_vm7 = vcmp.eq.s32.totalorder %v463_v26, 2  ;;  %vm465_vm8 = vcmp.eq.s32.totalorder %v463_v26, 0  ;;  %vm464_vm9 = vcmp.lt.s32.totalorder %v463_v26, 2 }
 0x272   :  { %v819_v2 = vadd.s32 4294967294, %v437_v1  ;;  %v682_v1 = vld [vmem:[#allocation5 + $0x80] sm:$0xff] }
 0x274   :  { %vm820_vm4 = vcmp.lt.s32.totalorder %v819_v2, 0 }
 0x275   :  { %v440_v4 = vsel %vm820_vm4, 0, %v819_v2  ;;  %v684_v2 = vld [vmem:[#allocation5 + $0x90] sm:$0xff] }
 0x276   :  { %v441_v6 = vsub.s32 32, %v440_v4  ;;  %v445_v7 = vsub.s32 4294967266, %v440_v4  ;;  %v442_v8 = vshll.u32 %v433_v62, %v440_v4  ;;  %v683_v62 = vld [vmem:[#allocation5 + $0x88] sm:$0xff]  ;;  %v1028_v4 = vpack.c.bf16 %v684_v2, %v682_v1 }
 0x277   :  { %v1026_v0 = vpack.c.bf16 %v685_v63, %v683_v62 }
 0x278   :  { %v443_v10 = vshrl.u32 %v425_v5, %v441_v6  ;;  %v446_v11 = vadd.s32 127, %v445_v7  ;;  %v687_v5 = vld [vmem:[#allocation5 + $0xa8] sm:$0xff]  ;;  %v689_v6 = vld [vmem:[#allocation5 + $0xb8] sm:$0xff]  ;;  %v686_v7 = vld [vmem:[#allocation5 + $0xa0] sm:$0xff] }
 0x27a   :  { %v444_v53 = vor.u32 %v443_v10, %v442_v8  ;;  %v447_v12 = vshll.u32 %v446_v11, 23  ;;  %v1030_v8 = vpack.c.bf16 %v689_v6, %v687_v5  ;;  %v688_v10 = vld [vmem:[#allocation5 + $0xb0] sm:$0xff]  ;;  %v691_v11 = vld [vmem:[#allocation5 + $0xc8] sm:$0xff] }
 0x27c   :  { %v448_v13 = vor.u32 4788187, %v447_v12  ;;  %v451_v15 = vcvt.s32.f32 %v444_v53  ;;  %v693_v53 = vld [vmem:[#allocation5 + $0xd8] sm:$0xff]  ;;  %v1032_v12 = vpack.c.bf16 %v688_v10, %v686_v7 }
 0x27e   :  { %v449_v14 = vand.u32 2147483647, %v448_v13  ;;  %v1034_v13 = vpack.c.bf16 %v693_v53, %v691_v11 }
 0x280   :  { %v452_v17 = vmul.f32 %v451_v15, %v449_v14  ;;  %v690_v14 = vld [vmem:[#allocation5 + $0xc0] sm:$0xff]  ;;  %v692_v15 = vld [vmem:[#allocation5 + $0xd0] sm:$0xff] }
 0x282   :  { %v453_v20 = vxor.u32 2147483648, %v452_v17 }
 0x284   :  { %v454_v21 = vsel %vm371_vm5, %v453_v20, %v452_v17  ;;  %v695_v17 = vld [vmem:[#allocation5 + $0xe8] sm:$0xff]  ;;  %v1036_v20 = vpack.c.bf16 %v692_v15, %v690_v14 }
 0x285   :  { %v457_v23 = vsel %vm370_vm6, %v1383_v3, %v454_v21  ;;  %v675_v3 = vld [vmem:[#allocation5 + $0x48] sm:$0xff]  ;;  %v1038_v21 = vpack.c.bf16 %v697_v19, %v695_v17 }
 0x286   :  { %1074 = vcosq.f32 %v457_v23  ;;  %v1018_v52 = vpack.c.bf16 %v677_v18, %v675_v3 }
 0x287   :  { %1076 = vsinq.f32 %v457_v23  ;;  %v696_v23 = vld [vmem:[#allocation5 + $0xf0] sm:$0xff] }
 0x288   :  { %1019 = vmatprep.subr.bf16.mxu1 %v1018_v52  ;;  %v1040_v24 = vpack.c.bf16 %v696_v23, %v694_v22 }
 0x289   :  { %1021 = vmatpush1.bf16.msra.mxu1 %v1020_v57 }
 0x28a   :  { %1023 = vmatprep.subr.bf16.mxu1 %v1022_v59 }
 0x28d   :  { %1025 = vmatpush1.bf16.msra.mxu1 %v1024_v61 }
 0x28e   :  { %1027 = vmatprep.subr.bf16.mxu1 %v1026_v0 }
 0x290   :  { %v1075_v27 = vpop.eup %1074 }
 0x291   :  { %v1077_v29 = vpop.eup %1076  ;;  %v469_v31 = vxor.u32 2147483648, %v1075_v27  ;;  %1029 = vmatpush1.bf16.msra.mxu1 %v1028_v4 }
 0x292   :  { %v466_v32 = vxor.u32 2147483648, %v1077_v29  ;;  %1031 = vmatprep.subr.bf16.mxu1 %v1030_v8 }
 0x293   :  { %v470_v33 = vsel %vm468_vm7, %v469_v31, %v1077_v29 }
 0x294   :  { %v467_v35 = vsel %vm465_vm8, %v1075_v27, %v466_v32 }
 0x295   :  { %v471_v9 = vsel %vm464_vm9, %v467_v35, %v470_v33  ;;  %1033 = vmatpush1.bf16.msra.mxu1 %v1032_v12 }
 0x296   :  { %v472_v37 = vsel %vm461_vm11, nan, %v471_v9  ;;  %1035 = vmatprep.subr.bf16.mxu1 %v1034_v13 }
 0x297   :  { %940 = vmatmul.mubr.msk.f32.vlgmr.msra.gmra.mrb[2].mxu0 %vm488_vm10, %v472_v37 }
 0x299   :  { %1037 = vmatpush1.bf16.msra.mxu1 %v1036_v20 }
 0x29a   :  { %1039 = vmatprep.subr.bf16.mxu1 %v1038_v21 }
 0x29d   :  { %1041 = vmatpush1.bf16.msra.mxu1 %v1040_v24 }
 0x36a   :  { %v558_v26 = vpop.f32.mrb[2].mxu0 }
 0x36b   :  { %v1418_v27 = vadd.f32 %v821_v25, %v558_v26  ;;  %v941_v29 = vpop.f32.mrb[3].mxu0 }
 0x36d   :  { %v565_v31 = vand.u32 2139095040, %v1418_v27  ;;  %v562_v9 = vand.u32 2147483647, %v1418_v27  ;;  %vm564_vm3 = vcmp.lt.s32.totalorder %v1418_v27, 0  ;;  %vm654_vm8 = vweird.f32 %v1418_v27 }
 0x36f   :  { %v566_v32 = vshrl.u32 %v565_v31, 23  ;;  %v569_v40 = vand.u32 8388607, %v562_v9  ;;  %vm563_vm4 = vcmp.le.f32.partialorder %v562_v9, 0.7853982 }
 0x371   :  { %v823_v33 = vadd.s32 4294967169, %v566_v32  ;;  %v570_v52 = vor.u32 8388608, %v569_v40 }
 0x373   :  { %v572_v35 = vadd.s32 1, %v823_v33 }
 0x375   :  { %vm573_vm12 = vcmp.gt.s32.totalorder %v572_v35, 0 }
 0x376   :  { %v574_v37 = vsel %vm573_vm12, %v572_v35, 0 }
 0x377   :  { %v576_v39 = vand.u32 31, %v574_v37  ;;  %v575_v43 = vshrl.u32 %v574_v37, 5 }
 0x379   :  { %v577_v42 = vsub.s32 32, %v576_v39  ;;  %v579_v44 = vshll.u32 %v1174_v36, %v576_v39  ;;  %v582_v45 = vshll.u32 %v1175_v38, %v576_v39  ;;  %v585_v48 = vshll.u32 %v1176_v41, %v576_v39 }
 0x37a   :  { %v588_v50 = vshll.u32 %v1171_v28, %v576_v39  ;;  %v591_v3 = vshll.u32 %v1172_v30, %v576_v39  ;;  %vm594_vm13 = vcmp.lt.s32.totalorder %v575_v43, 1  ;;  %vm597_vm14 = vcmp.lt.s32.totalorder %v575_v43, 4 }
 0x37b   :  { %v580_v46 = vshrl.u32 %v1175_v38, %v577_v42  ;;  %v583_v47 = vshrl.u32 %v1176_v41, %v577_v42  ;;  %v586_v49 = vshrl.u32 %v1171_v28, %v577_v42  ;;  %v589_v51 = vshrl.u32 %v1172_v30, %v577_v42 }
 0x37c   :  { %v592_v18 = vshrl.u32 %v1173_v34, %v577_v42  ;;  %v578_v56 = vshrl.u32 %v1174_v36, %v577_v42  ;;  %vm596_vm15 = vcmp.lt.s32.totalorder %v575_v43, 3  ;;  %vm595_vm0 = vcmp.lt.s32.totalorder %v575_v43, 2 }
 0x37d   :  { %v581_v54 = vor.u32 %v580_v46, %v579_v44  ;;  %v584_v55 = vor.u32 %v583_v47, %v582_v45  ;;  %v587_v57 = vor.u32 %v586_v49, %v585_v48  ;;  %v590_v58 = vor.u32 %v589_v51, %v588_v50 }
 0x37e   :  { %v593_v38 = vor.u32 %v592_v18, %v591_v3  ;;  %v610_v34 = vshll.u32 %v570_v52, 8 }
 0x37f   :  { %v599_v16 = vsel %vm597_vm14, %v587_v57, 2102212464  ;;  %v602_v41 = vsel %vm594_vm13, %v581_v54, %v584_v55  ;;  %v606_v59 = vsel %vm594_vm13, %v584_v55, %v587_v57  ;;  %v603_v28 = vsel %vm597_vm14, %v590_v58, 920167782 }
 0x380   :  { %v607_v60 = vsel %vm597_vm14, %v593_v38, 1326507024  ;;  %v604_v30 = vsel %vm596_vm15, %v587_v57, %v603_v28  ;;  %v598_v62 = vsel %vm594_vm13, %v578_v56, %v581_v54  ;;  %v600_v63 = vsel %vm596_vm15, %v584_v55, %v599_v16  ;;  %v698_v38 = vld [vmem:[%s1473_s8] sm:$0x3]  ;;  %s1177_s8 = smov [#allocation7]  }
 0x381   :  { %v608_v61 = vsel %vm596_vm15, %v590_v58, %v607_v60  ;;  %v605_v0 = vsel %vm595_vm0, %v602_v41, %v604_v30  ;;  %v601_v7 = vsel %vm595_vm0, %v598_v62, %v600_v63  ;;  %v700_v55 = vlaneseq  ;;  %s801_s21 = sshll.u32 %s1177_s8, 4  ;;  %s802_s21 = int_to_ptr.vmem [resolvable:$true] %s801_s21 }
 0x382   :  { %v609_v1 = vsel %vm595_vm0, %v606_v59, %v608_v61  ;;  %v1438_v5 = vmul.u32.u64.low %v610_v34, %v605_v0  ;;  %v1439_v6 = vmul.u32.u64.high %v610_v34, %v605_v0, %v1438_v5  ;;  %v617_v8 = vmul.u32 %v610_v34, %v601_v7  ;;  %s1134_s22 = scalar_lea.vmem %s802_s21, 256  ;;  %p1139_p3 = scmp.lt.s32.totalorder %s802_s21, %s802_s21 }
 0x383   :  { %v1435_v2 = vmul.u32.u64.low %v610_v34, %v609_v1  ;;  %v1436_v4 = vmul.u32.u64.high %v610_v34, %v609_v1, %v1435_v2  ;;  %v701_v57 = vshrl.u32 %v700_v55, 7  ;;  %p1135_p2 = scmp.ne.s32.totalorder %s802_s21, %s1134_s22  ;;  %p1140_p4 = scmp.lt.s32.totalorder %s1134_s22, %s1134_s22 }
 0x384   :  { %v620_v36 = vadd.s32 1, %v1439_v6 }
 0x385   :  { %vm619_vm1 = vc.u32 %v1436_v4, %v1438_v5  ;;  %v618_v22 = vadd.s32 %v1438_v5, %v1436_v4  ;;  %v702_v58 = vsub.s32 0, %v701_v57  ;;  %v706_v16 = vsub.s32 1, %v701_v57  ;;  %p1141_p5 = por %p1140_p4, %p1139_p3 }
 0x386   :  { %v621_v10 = vsel %vm619_vm1, %v620_v36, %v1439_v6 }
 0x387   :  { %v622_v11 = vadd.s32 %v621_v10, %v617_v8  ;;  %v703_v41 = vrot.slane %v698_v38, %v702_v58  ;;  %v707_v59 = vrot.slane %v698_v38, %v706_v16  ;;  %p1142_p6 = pnand %p1141_p5, %p1135_p2 }
 0x389   :  { %v623_v53 = vadd.s32 536870912, %v622_v11 }
 0x38b   :  { %v624_v12 = vshrl.u32 %v623_v53, 30 }
 0x38d   :  { %v625_v13 = vshll.u32 %v624_v12, 30  ;;  %v648_v40 = vsub.s32 4, %v624_v12 }
 0x38f   :  { %v626_v14 = vsub.s32 %v622_v11, %v625_v13  ;;  %v649_v44 = vsel %vm564_vm3, %v648_v40, %v624_v12 }
 0x390   :  { %v651_v46 = vsel %vm563_vm4, 0, %v649_v44 }
 0x391   :  { %v628_v15 = vsub.s32 0, %v626_v14  ;;  %v655_v47 = vadd.s32 3, %v651_v46 }
 0x393   :  { %v824_v17 = vmin.u32 %v628_v15, %v626_v14  ;;  %v656_v48 = vand.u32 3, %v655_v47 }
 0x395   :  { %v630_v19 = vclz %v824_v17  ;;  %vm661_vm5 = vcmp.eq.s32.totalorder %v656_v48, 2  ;;  %vm658_vm6 = vcmp.eq.s32.totalorder %v656_v48, 0  ;;  %vm657_vm7 = vcmp.lt.s32.totalorder %v656_v48, 2 }
 0x397   :  { %v825_v20 = vadd.s32 4294967294, %v630_v19 }
 0x399   :  { %vm826_vm2 = vcmp.lt.s32.totalorder %v825_v20, 0 }
 0x39a   :  { %v633_v21 = vsel %vm826_vm2, 0, %v825_v20 }
 0x39b   :  { %v634_v23 = vsub.s32 32, %v633_v21  ;;  %v638_v24 = vsub.s32 4294967266, %v633_v21  ;;  %v635_v25 = vshll.u32 %v626_v14, %v633_v21 }
 0x39d   :  { %v636_v26 = vshrl.u32 %v618_v22, %v634_v23  ;;  %v639_v29 = vadd.s32 127, %v638_v24 }
 0x39f   :  { %v637_v31 = vor.u32 %v636_v26, %v635_v25  ;;  %v640_v32 = vshll.u32 %v639_v29, 23 }
 0x3a1   :  { %v641_v33 = vor.u32 4788187, %v640_v32  ;;  %v644_v37 = vcvt.s32.f32 %v637_v31 }
 0x3a3   :  { %v642_v35 = vand.u32 2147483647, %v641_v33 }
 0x3a5   :  { %v645_v39 = vmul.f32 %v644_v37, %v642_v35 }
 0x3a7   :  { %v646_v42 = vxor.u32 2147483648, %v645_v39 }
 0x3a9   :  { %v647_v43 = vsel %vm564_vm3, %v646_v42, %v645_v39 }
 0x3aa   :  { %v650_v45 = vsel %vm563_vm4, %v1418_v27, %v647_v43 }
 0x3ab   :  { %1078 = vcosq.f32 %v650_v45 }
 0x3ac   :  { %1080 = vsinq.f32 %v650_v45 }
 0x3b5   :  { %v1079_v49 = vpop.eup %1078 }
 0x3b6   :  { %v1081_v50 = vpop.eup %1080  ;;  %v662_v51 = vxor.u32 2147483648, %v1079_v49 }
 0x3b7   :  { %v659_v3 = vxor.u32 2147483648, %v1081_v50 }
 0x3b8   :  { %v663_v18 = vsel %vm661_vm5, %v662_v51, %v1081_v50 }
 0x3b9   :  { %v660_v52 = vsel %vm658_vm6, %v1079_v49, %v659_v3 }
 0x3ba   :  { %v664_v9 = vsel %vm657_vm7, %v660_v52, %v663_v18 }
 0x3bb   :  { %v665_v54 = vsel %vm654_vm8, nan, %v664_v9 }
 0x3bc   :  { %775 = vmatmul.mubr.f32.vlgmr.msra.gmra.mrb[2].mxu1 %v665_v54 }
 0x48f   :  { %v776_v56 = vpop.f32.mrb[2].mxu1 }
 0x490   :  { %v777_v28 = vadd.f32 %v776_v56, %v703_v41  ;;  %v778_v60 = vpop.f32.mrb[3].mxu1 }
 0x491   :  { %v779_v30 = vadd.f32 %v778_v60, %v707_v59 }
 0x492   :  { %v781_v61 = vsub.f32 0.0, %v777_v28 }
 0x493   :  { %v782_v34 = vsub.f32 0.0, %v779_v30 }
 0x494   :  { %v783_v27 = vmul.f32 1.442695, %v781_v61 }
 0x495   :  { %v785_v62 = vmul.f32 1.442695, %v782_v34 }
 0x496   :  { %1082 = vpow2.f32 %v783_v27 }
 0x497   :  { %1084 = vpow2.f32 %v785_v62 }
 0x4a0   :  { %v1083_v63 = vpop.eup %1082 }
 0x4a1   :  { %v1085_v0 = vpop.eup %1084  ;;  %v787_v1 = vadd.f32 1.0, %v1083_v63 }
 0x4a2   :  { %v788_v2 = vadd.f32 1.0, %v1085_v0 }
 0x4a3   :  { %1086 = vrcp.f32 %v787_v1 }
 0x4a4   :  { %1088 = vrcp.f32 %v788_v2 }
 0x4ad   :  { %v1087_v4 = vpop.eup %1086 }
 0x4ae   :  { %v1089_v5 = vpop.eup %1088  ;;  %793 = vst [vmem:[#allocation7] sm:$0xff] %v1087_v4 }
 0x4af   :  { %794 = vst [vmem:[#allocation7 + $0x8] sm:$0xff] %v1089_v5 }
 0x4b0   :  { %1145 = shalt.err (!%p1142_p6)
}
 0x4b1   :  { %s1146_s25 = scalar_lea.hbm %s1474_s9, 256 }
 0x4b2   :  { %p1147_p7 = scmp.ne.s32.totalorder %s1474_s9, %s1146_s25  ;;  %p1150_p8 = scmp.lt.u32.totalorder %s1146_s25, %s1474_s9 }
 0x4b4   :  { %p1152_p9 = pnand %p1150_p8, %p1147_p7 }
 0x4b6   :  { %1155 = shalt.err (!%p1152_p9)
}
 0x4b7   :  { %804 = dma.vmem_to_hbm [thread:$0]  %s802_s21, 256, %s1474_s9, [#allocation4]  }
 0x4b8   :  { %1160 = dma.done.wait [#allocation4], 256  }
 0x4b9   :  { %1161 = vsyncadd [#allocation4], 4294967040 }
 0x4ba   :  { %808 = vsyncpa [#allocation3], 1 }
 0x4bb   :  { %809 = vsyncpa [#allocation6], 1 }
 0x4bc   :  { %810 = vsyncpa [#allocation4], 1 }

</bundles_post_ra>
